<compile_context>
chip_gen: v6e
topology: v6e:2x2x1
jax: 0.10.0
libtpu: 0.0.40
codegen_flags: <defaults>
</compile_context>

<pallas_src>
import functools

import jax
import jax.numpy as jnp
from jax.experimental import pallas as pl
from jax.experimental.pallas import tpu as pltpu


def _ce_kernel(logits_ref, target_ref, part_ref, *, n_total, tm):
    i = pl.program_id(0)

    logits = logits_ref[...]                                   # [TM, C], input dtype
    tgt = target_ref[...]                                      # [TM, 1], int32
    tm_blk, c = logits.shape

    # Numerically stable shift, kept in the input dtype (bf16-friendly VPU path).
    row_max = jnp.max(logits, axis=-1, keepdims=True)          # [TM, 1]
    shifted = logits - row_max                                  # [TM, C]

    # log-sum-exp of shifted values; exp/accumulate in f32 for accuracy.
    sum_exp = jnp.sum(jnp.exp(shifted.astype(jnp.float32)),
                      axis=-1, keepdims=True)                   # [TM, 1], f32

    # Target logit via select on the *input-dtype* shifted values; only the
    # reduced (TM, 1) result is upcast (halves the full-width temp for bf16,
    # zero precision loss since it is the same value either way).
    col_ids = jax.lax.broadcasted_iota(jnp.int32, (tm_blk, c), 1)
    tgt_shifted = jnp.sum(
        jnp.where(col_ids == tgt, shifted, jnp.zeros_like(shifted)),
        axis=-1, keepdims=True,
    ).astype(jnp.float32)                                       # [TM, 1]

    per_example = jnp.log(sum_exp) - tgt_shifted                # [TM, 1], f32

    # Mask padded rows only when the batch is ragged (static trace-time check);
    # the select also kills any NaN/Inf coming from garbage padded rows.
    if n_total % tm != 0:
        row_ids = i * tm + jax.lax.broadcasted_iota(jnp.int32, (tm_blk, 1), 0)
        per_example = jnp.where(row_ids < n_total, per_example, 0.0)

    # Per-block partial sum -> this block's private output slice.  No shared
    # state across grid steps, so the axis is safe to mark "parallel".
    block_sum = jnp.sum(per_example).astype(jnp.float32)
    part_ref[...] = jnp.broadcast_to(block_sum.reshape(1, 1, 1), part_ref.shape)


def _vmem_policy():
    """(per-block logits byte budget, scoped-VMEM limit) by TPU generation."""
    try:
        cap = int(pltpu.get_tpu_info().vmem_capacity_bytes)
    except Exception:  # unknown device / API mismatch -> conservative defaults
        cap = 0
    if cap >= 96 * 1024 * 1024:            # v5e / v6e class: 128 MiB physical VMEM
        return 8 * 1024 * 1024, 64 * 1024 * 1024
    if cap >= 48 * 1024 * 1024:            # v7x class: 64 MiB physical VMEM
        return 4 * 1024 * 1024, 40 * 1024 * 1024
    return 4 * 1024 * 1024, 32 * 1024 * 1024


def _pick_tm(n, c, dtype_bytes, block_budget):
    """Row-block size: capped by bytes (not rows), aligned to sublane packing."""
    align = max(8, 32 // max(1, dtype_bytes))       # 8 f32 / 16 bf16 / 32 int8
    rows = max(align, block_budget // max(1, c * dtype_bytes))
    rows = (rows // align) * align
    n_pad = ((n + align - 1) // align) * align
    return max(align, min(rows, n_pad))


def cls_criterion(output: jax.Array, target: jax.Array) -> jax.Array:
    """Mean cross-entropy over the batch, matching nn.CrossEntropyLoss().

    output: [N, C] float logits
    target: [N]    integer class indices
    returns scalar f32 loss
    """
    n, c = output.shape
    target_2d = target.astype(jnp.int32).reshape(n, 1)

    block_budget, vmem_limit = _vmem_policy()
    tm = _pick_tm(n, c, output.dtype.itemsize, block_budget)
    num_blocks = pl.cdiv(n, tm)

    kernel = functools.partial(_ce_kernel, n_total=n, tm=tm)

    cost = pl.CostEstimate(
        flops=5 * n * c,
        transcendentals=n * c + 2 * n,
        bytes_accessed=n * c * output.dtype.itemsize + n * 4
        + num_blocks * 8 * 128 * 4,
    )

    partials = pl.pallas_call(
        kernel,
        out_shape=jax.ShapeDtypeStruct((num_blocks, 8, 128), jnp.float32),
        grid_spec=pltpu.PrefetchScalarGridSpec(
            num_scalar_prefetch=0,
            grid=(num_blocks,),
            in_specs=[
                pl.BlockSpec((tm, c), lambda i: (i, 0)),
                pl.BlockSpec((tm, 1), lambda i: (i, 0)),
            ],
            out_specs=pl.BlockSpec((1, 8, 128), lambda i: (i, 0, 0)),
        ),
        compiler_params=pltpu.CompilerParams(
            dimension_semantics=("parallel",),      # independent per-block partials
            vmem_limit_bytes=vmem_limit,
        ),
        cost_estimate=cost,
    )(output, target_2d)

    # Tiny final reduction + mean over the TRUE batch size in plain XLA.
    return jnp.sum(partials[:, 0, 0]) / jnp.float32(n)


def _reference(logits, target):
    logp = jax.nn.log_softmax(logits.astype(jnp.float32), axis=-1)
    picked = jnp.take_along_axis(logp, target[:, None].astype(jnp.int32), axis=-1)[:, 0]
    return -jnp.mean(picked)


if __name__ == "__main__":
    key = jax.random.PRNGKey(0)
    k1, k2, k3, k4 = jax.random.split(key, 4)

    # Test 1: small aligned case
    N, C = 8, 32
    logits = jax.random.normal(k1, (N, C), dtype=jnp.float32)
    target = jax.random.randint(k2, (N,), 0, C, dtype=jnp.int32)
    loss = jax.block_until_ready(cls_criterion(logits, target))
    ref = _reference(logits, target)
    assert jnp.allclose(loss, ref, atol=1e-5), (loss, ref)

    # Test 2: ragged batch (N not a multiple of the sublane alignment) exercises
    # the padded-row mask path and the partial trailing block.
    N2, C2 = 13, 96
    logits2 = jax.random.normal(k3, (N2, C2), dtype=jnp.float32)
    target2 = jax.random.randint(k4, (N2,), 0, C2, dtype=jnp.int32)
    loss2 = jax.block_until_ready(cls_criterion(logits2, target2))
    ref2 = _reference(logits2, target2)
    assert jnp.allclose(loss2, ref2, atol=1e-5), (loss2, ref2)

    print("KERNEL_OK")
</pallas_src>

<mosaic_0001>
module attributes {stable_mosaic.version = 11 : i64} {
  func.func @_ce_kernel(%arg0: i32, %arg1: memref<8x32xf32, #tpu.memory_space<vmem>>, %arg2: memref<8x1xi32, #tpu.memory_space<vmem>>, %arg3: memref<1x8x128xf32, #tpu.memory_space<vmem>>) attributes {dimension_semantics = [#tpu.dimension_semantics<parallel>], iteration_bounds = array<i64: 1>, scalar_prefetch = 0 : i64, scratch_operands = 0 : i64, tpu.core_type = #tpu.core_type<tc>, window_params = [{transform_indices = @transform_0, window_bounds = array<i64: 8, 32>}, {transform_indices = @transform_1, window_bounds = array<i64: 8, 1>}, {transform_indices = @transform_2, window_bounds = array<i64: 1, 8, 128>}]} {
    %c0 = arith.constant 0 : index
    %c0_0 = arith.constant 0 : index
    %0 = vector.load %arg1[%c0, %c0_0] : memref<8x32xf32, #tpu.memory_space<vmem>>, vector<8x32xf32>
    %c0_1 = arith.constant 0 : index
    %c0_2 = arith.constant 0 : index
    %1 = vector.load %arg2[%c0_1, %c0_2] : memref<8x1xi32, #tpu.memory_space<vmem>>, vector<8x1xi32>
    %cst = arith.constant dense<0xFF800000> : vector<8xf32>
    %2 = vector.multi_reduction <maximumf>, %0, %cst [1] : vector<8x32xf32> to vector<8xf32>
    %3 = vector.shape_cast %2 : vector<8xf32> to vector<8x1xf32>
    %4 = vector.broadcast %3 : vector<8x1xf32> to vector<8x32xf32>
    %5 = arith.subf %0, %4 : vector<8x32xf32>
    %6 = math.exp %5 : vector<8x32xf32>
    %cst_3 = arith.constant dense<0.000000e+00> : vector<8xf32>
    %7 = vector.multi_reduction <add>, %6, %cst_3 [1] : vector<8x32xf32> to vector<8xf32>
    %8 = vector.shape_cast %7 : vector<8xf32> to vector<8x1xf32>
    %9 = tpu.iota {dimensions = array<i32: 1>} : vector<8x32xi32>
    %10 = vector.broadcast %1 : vector<8x1xi32> to vector<8x32xi32>
    %11 = arith.cmpi eq, %9, %10 : vector<8x32xi32>
    %cst_4 = arith.constant 0.000000e+00 : f32
    %12 = vector.broadcast %cst_4 : f32 to vector<8x32xf32>
    %13 = arith.select %11, %5, %12 : vector<8x32xi1>, vector<8x32xf32>
    %cst_5 = arith.constant dense<0.000000e+00> : vector<8xf32>
    %14 = vector.multi_reduction <add>, %13, %cst_5 [1] : vector<8x32xf32> to vector<8xf32>
    %15 = vector.shape_cast %14 : vector<8xf32> to vector<8x1xf32>
    %16 = math.log %8 : vector<8x1xf32>
    %17 = arith.subf %16, %15 : vector<8x1xf32>
    %18 = vector.shape_cast %17 : vector<8x1xf32> to vector<1x8x1xf32>
    %cst_6 = arith.constant dense<0.000000e+00> : vector<1xf32>
    %19 = vector.multi_reduction <add>, %18, %cst_6 [1, 2] : vector<1x8x1xf32> to vector<1xf32>
    %20 = vector.shape_cast %19 : vector<1xf32> to vector<1x1x1xf32>
    %21 = vector.extract %20[0, 0, 0] : f32 from vector<1x1x1xf32>
    %22 = vector.broadcast %21 : f32 to vector<1x1x1xf32>
    %23 = vector.shape_cast %22 : vector<1x1x1xf32> to vector<1x1x1xf32>
    %24 = vector.broadcast %23 : vector<1x1x1xf32> to vector<1x8x128xf32>
    %c0_7 = arith.constant 0 : index
    %c0_8 = arith.constant 0 : index
    %c0_9 = arith.constant 0 : index
    %25 = vector.load %arg3[%c0_7, %c0_8, %c0_9] : memref<1x8x128xf32, #tpu.memory_space<vmem>>, vector<1x8x128xf32>
    tpu.vector_store %arg3[%c0_7, %c0_8, %c0_9], %24 {strides = array<i32>} : memref<1x8x128xf32, #tpu.memory_space<vmem>>, vector<1x8x128xf32>,
    return
  }
  func.func @transform_0(%arg0: i32) -> (i32, i32) {
    %c0_i32 = arith.constant 0 : i32
    %c0_i32_0 = arith.constant 0 : i32
    return %arg0, %c0_i32 : i32, i32
  }
  func.func @transform_1(%arg0: i32) -> (i32, i32) {
    %c0_i32 = arith.constant 0 : i32
    %c0_i32_0 = arith.constant 0 : i32
    return %arg0, %c0_i32 : i32, i32
  }
  func.func @transform_2(%arg0: i32) -> (i32, i32, i32) {
    %c0_i32 = arith.constant 0 : i32
    %c0_i32_0 = arith.constant 0 : i32
    %c0_i32_1 = arith.constant 0 : i32
    return %arg0, %c0_i32, %c0_i32_0 : i32, i32, i32
  }
}

</mosaic_0001>

<bundles_post_ra>
// kernel: tpu_custom_call.1
= control target key start
LH: loop header
LB: loop body
LE: loop exit
PB: predicated region body
PF: predicated region fallthrough
CT: control target
= control target key end

     0   :  { %vm14_vm0 = vcmask 261120   ;;  %s124_s0 = inlined_call_operand.vmem [shape: f32[8,32], index: 0, kind: input, shape index: {}]   ;;  %s125_s1 = inlined_call_operand.vmem [shape: s32[8,1], index: 1, kind: input, shape index: {}]   ;;  %s126_s2 = inlined_call_operand.hbm [shape: f32[1,8,128], index: 2, kind: output, shape index: {}]  }
   0x1   :  { %v12_v0 = vld [vmem:[%s124_s0] sm:$0xff] }
   0x2   :  { %7 = vsyncpa [#allocation3], 0  ;;  %v15_v1 = vsel %vm14_vm0, %v12_v0, -inf  ;;  %v95_v2 = vmov 0   ;;  %v13_v3 = vld [vmem:[%s125_s1] sm:$0xff]  ;;  %v24_v7 = vlaneseq  ;;  %vm37_vm2 = vcmask 7168  }
   0x3   :  { %68 = vset.pattern.permute.xlu0 %v95_v2  ;;  %s96_s0 = smov [#allocation2]  }
   0x4   :  { %16 = vmax.xlane.f32.xlu0 %v15_v1  ;;  %v25_v8 = vand.u32 127, %v24_v7  ;;  %s56_s1 = sshll.u32 %s96_s0, 4  ;;  %s57_s1 = int_to_ptr.vmem [resolvable:$true] %s56_s1 }
   0x5   :  { %s73_s14 = scalar_lea.vmem %s57_s1, 128  ;;  %p78_p1 = scmp.lt.s32.totalorder %s57_s1, %s57_s1 }
   0x6   :  { %p74_p0 = scmp.ne.s32.totalorder %s57_s1, %s73_s14  ;;  %p79_p2 = scmp.lt.s32.totalorder %s73_s14, %s73_s14 }
   0x8   :  { %p80_p3 = por %p79_p2, %p78_p1 }
   0xa   :  { %p81_p4 = pnand %p80_p3, %p74_p0 }
  0x1a   :  { %27 = vperm.xlu0 %68, %v13_v3  }
  0x8d   :  { %v17_v4 = vpop.xlane.xlu0 %16 }
  0x8e   :  { %v18_v5 = vsub.f32 %v12_v0, %v17_v4 }
  0x90   :  { %v19_v6 = vmul.f32 1.442695, %v18_v5 }
  0x92   :  { %69 = vpow2.f32 %v19_v6 }
  0x95   :  { %v28_v9 = vpop.permute.xlu0 %27 }
  0x96   :  { %vm29_vm1 = vcmp.eq.s32.totalorder %v25_v8, %v28_v9 }
  0x97   :  { %v30_v12 = vsel %vm29_vm1, %v18_v5, 0.0 }
  0x98   :  { %v31_v13 = vsel %vm14_vm0, %v30_v12, 0.0 }
  0x9f   :  { %v70_v10 = vpop.eup %69 }
  0xa0   :  { %v21_v11 = vsel %vm14_vm0, %v70_v10, 0.0 }
  0xa1   :  { %22 = vadd.xlane.f32.xlu1 %v21_v11 }
  0xa5   :  { %32 = vadd.xlane.f32.xlu1 %v31_v13 }
 0x12a   :  { %v23_v14 = vpop.xlane.xlu1 %22 }
 0x12b   :  { %71 = vlog2.f32 %v23_v14 }
 0x12e   :  { %v33_v17 = vpop.xlane.xlu1 %32 }
 0x138   :  { %v72_v15 = vpop.eup %71 }
 0x139   :  { %v35_v16 = vmul.f32 0.6931472, %v72_v15 }
 0x13b   :  { %v36_v18 = vsub.f32 %v35_v16, %v33_v17 }
 0x13d   :  { %v38_v19 = vsel %vm37_vm2, %v36_v18, 0.0 }
 0x13e   :  { %39 = vadd.xlane.f32.xlu1 %v38_v19 }
 0x1c7   :  { %v40_v20 = vpop.xlane.xlu1 %39 }
 0x1c8   :  { %v41_v21 = vrot.slane %v40_v20, 4 }
 0x1ca   :  { %v42_v22 = vadd.f32 %v41_v21, %v40_v20 }
 0x1cc   :  { %v43_v23 = vrot.slane %v42_v22, 2 }
 0x1ce   :  { %v44_v24 = vadd.f32 %v43_v23, %v42_v22 }
 0x1d0   :  { %v45_v25 = vrot.slane %v44_v24, 1 }
 0x1d2   :  { %v46_v26 = vadd.f32 %v45_v25, %v44_v24 }
 0x1d4   :  { %64 = vpush %v46_v26 }
 0x205   :  { %s65_s13 = spop %64 }
 0x206   :  { %v48_v27 = vstv %s65_s13 }
 0x207   :  { %49 = vst [vmem:[#allocation2] sm:$0xff] %v48_v27 }
 0x208   :  { %84 = shalt.err (!%p81_p4)
}
 0x209   :  { %59 = dma.vmem_to_hbm [thread:$0]  %s57_s1, 128, %s126_s2, [#allocation3]  }
 0x20a   :  { %93 = dma.done.wait [#allocation3], 128  }
 0x20b   :  { %94 = vsyncadd [#allocation3], 4294967168 }
 0x20c   :  { %63 = vsyncpa [#allocation3], 1 }

</bundles_post_ra>
